<compile_context>
chip_gen: v7x
topology: tpu7x:2x2x1
jax: 0.10.0
libtpu: 0.0.40
codegen_flags: <defaults>
</compile_context>

<pallas_src>
import functools
import math

import jax
import jax.numpy as jnp
from jax.experimental import pallas as pl
from jax.experimental.pallas import tpu as pltpu


def _round_up(x, m):
    return (x + m - 1) // m * m


def _cdiv(a, b):
    return (a + b - 1) // b


@functools.lru_cache(maxsize=None)
def _vmem_budget_bytes():
    """Generation-aware scoped-VMEM budget (3/4 of physical, capped at 96 MiB).

    v5e/v6e: 128 MiB physical -> 96 MiB budget; v7x: 64 MiB -> 48 MiB.
    Falls back to a conservative 48 MiB if the query is unavailable.
    """
    try:
        cap = int(getattr(pltpu.get_tpu_info(), "vmem_capacity_bytes",
                          64 * 1024 * 1024))
    except Exception:
        cap = 64 * 1024 * 1024
    return min(cap * 3 // 4, 96 * 1024 * 1024)


def _linear_kernel(x_ref, w_ref, b_ref, o_ref):
    # x_ref: (TN, K)  w_ref: (K, TM)  b_ref: (1, TM)  o_ref: (TN, TM)
    x = x_ref[...]
    w = w_ref[...]
    k_dim = x.shape[-1]
    if k_dim <= 16:
        # Tiny contraction dim (n_vars): K broadcast-FMA steps on the VPU avoid
        # the MXU push/pop entirely; the kernel is HBM-bound either way.
        acc = jnp.broadcast_to(b_ref[...].astype(jnp.float32), o_ref.shape)
        for k in range(k_dim):
            acc = acc + (x[:, k:k + 1].astype(jnp.float32)
                         * w[k:k + 1, :].astype(jnp.float32))
    else:
        acc = jnp.dot(x, w, preferred_element_type=jnp.float32) + b_ref[...]
    o_ref[...] = acc.astype(o_ref.dtype)


def pack_params(weight, bias):
    """One-time packing: weight (M, K) -> W^T (K, M), bias (M,) -> (1, M)."""
    w_t = jnp.asarray(weight, jnp.float32).T
    b = jnp.asarray(bias, jnp.float32).reshape(1, -1)
    return w_t, b


@jax.jit
def consequents_forward(x, w_t_packed, b_packed):
    """x: (N, n_vars) f32; w_t_packed: (K, M); b_packed: (1, M) -> (N, M)."""
    N, K = x.shape
    Kw, M = w_t_packed.shape
    assert Kw == K, (Kw, K)

    x = x.astype(jnp.float32)

    # ---- static (trace-time) tile selection --------------------------------
    TM = M if M <= 2048 else 2048              # tile M only when it is large
    Kp = _round_up(max(K, 1), 8)               # VMEM layout padding estimate
    TMp = _round_up(TM, 128)

    budget = _vmem_budget_bytes()

    def _vmem_bytes(tn):
        # double-buffered x/out tiles + (conservatively double-buffered) W, b
        return 4 * (2 * tn * (Kp + TMp) + 2 * (Kp * TMp + TMp))

    TN = 4096                                  # big tiles amortize per-step cost
    while TN > 8 and _vmem_bytes(TN) > budget:
        TN //= 2
    # Keep >= 2 row blocks for mid/large batches so both v7x TensorCores work
    # (harmless on the single-core v5e/v6e).
    TN = max(8, min(TN, _round_up(_cdiv(N, 2), 8)))

    grid = (_cdiv(N, TN), _cdiv(M, TM))

    return pl.pallas_call(
        _linear_kernel,
        out_shape=jax.ShapeDtypeStruct((N, M), jnp.float32),
        grid_spec=pl.GridSpec(
            grid=grid,
            in_specs=[
                pl.BlockSpec((TN, K), lambda i, j: (i, 0)),   # x rows (streamed)
                pl.BlockSpec((K, TM), lambda i, j: (0, j)),   # W^T column tile
                pl.BlockSpec((1, TM), lambda i, j: (0, j)),   # bias tile
            ],
            out_specs=pl.BlockSpec((TN, TM), lambda i, j: (i, j)),
        ),
        compiler_params=pltpu.CompilerParams(
            dimension_semantics=("parallel", "parallel"),
            vmem_limit_bytes=budget),
    )(x, w_t_packed, b_packed)


def make_consequents_params(n_sets, n_classes, key):
    """Deterministic parameter init matching Consequents.__init__ shapes."""
    n_vars = len(n_sets)
    n_rules = 1
    for s in n_sets:
        n_rules *= s
    out_features = n_rules if n_classes == 1 else n_rules * n_classes
    # PyTorch nn.Linear default: U(-1/sqrt(fan_in), 1/sqrt(fan_in))
    bound = 1.0 / math.sqrt(n_vars)
    kw, kb = jax.random.split(key)
    weight = jax.random.uniform(kw, (out_features, n_vars), jnp.float32,
                                minval=-bound, maxval=bound)
    bias = jax.random.uniform(kb, (out_features,), jnp.float32,
                              minval=-bound, maxval=bound)
    return weight, bias


if __name__ == "__main__":
    key = jax.random.PRNGKey(0)
    k_param, k_param2, k_x, k_x2 = jax.random.split(key, 4)

    # classification example: n_sets=[2,3,2] -> n_vars=3, n_rules=12; n_classes=3
    n_sets = [2, 3, 2]
    n_classes = 3
    N = 8

    weight, bias = make_consequents_params(n_sets, n_classes, k_param)
    w_t_packed, b_packed = pack_params(weight, bias)
    x = jax.random.normal(k_x, (N, len(n_sets)), jnp.float32)

    out = consequents_forward(x, w_t_packed, b_packed)
    out = jax.block_until_ready(out)

    ref = jnp.matmul(x, weight.T, precision=jax.lax.Precision.HIGHEST) + bias
    assert out.shape == (N, weight.shape[0]), out.shape
    assert jnp.max(jnp.abs(out - ref)) < 1e-4

    # regression example: n_classes == 1 -> out_features = n_rules = 12
    weight_r, bias_r = make_consequents_params(n_sets, 1, k_param2)
    w_t_r, b_r = pack_params(weight_r, bias_r)
    x_r = jax.random.normal(k_x2, (5, len(n_sets)), jnp.float32)  # ragged N
    out_r = consequents_forward(x_r, w_t_r, b_r)
    out_r = jax.block_until_ready(out_r)
    ref_r = jnp.matmul(x_r, weight_r.T,
                       precision=jax.lax.Precision.HIGHEST) + bias_r
    assert out_r.shape == (5, weight_r.shape[0]), out_r.shape
    assert jnp.max(jnp.abs(out_r - ref_r)) < 1e-4

    print("KERNEL_OK")
</pallas_src>

<mosaic_0001>
module attributes {stable_mosaic.version = 11 : i64} {
  func.func @_linear_kernel(%arg0: i32, %arg1: i32, %arg2: memref<8x3xf32, #tpu.memory_space<vmem>>, %arg3: memref<3x36xf32, #tpu.memory_space<vmem>>, %arg4: memref<1x36xf32, #tpu.memory_space<vmem>>, %arg5: memref<8x36xf32, #tpu.memory_space<vmem>>) attributes {dimension_semantics = [#tpu.dimension_semantics<parallel>, #tpu.dimension_semantics<parallel>], iteration_bounds = array<i64: 1, 1>, scalar_prefetch = 0 : i64, scratch_operands = 0 : i64, tpu.core_type = #tpu.core_type<tc>, window_params = [{transform_indices = @transform_0, window_bounds = array<i64: 8, 3>}, {transform_indices = @transform_1, window_bounds = array<i64: 3, 36>}, {transform_indices = @transform_2, window_bounds = array<i64: 1, 36>}, {transform_indices = @transform_3, window_bounds = array<i64: 8, 36>}]} {
    %c0 = arith.constant 0 : index
    %c0_0 = arith.constant 0 : index
    %0 = vector.load %arg2[%c0, %c0_0] : memref<8x3xf32, #tpu.memory_space<vmem>>, vector<8x3xf32>
    %c0_1 = arith.constant 0 : index
    %c0_2 = arith.constant 0 : index
    %1 = vector.load %arg3[%c0_1, %c0_2] : memref<3x36xf32, #tpu.memory_space<vmem>>, vector<3x36xf32>
    %c0_3 = arith.constant 0 : index
    %c0_4 = arith.constant 0 : index
    %2 = vector.load %arg4[%c0_3, %c0_4] : memref<1x36xf32, #tpu.memory_space<vmem>>, vector<1x36xf32>
    %3 = vector.shape_cast %2 : vector<1x36xf32> to vector<1x36xf32>
    %4 = vector.broadcast %3 : vector<1x36xf32> to vector<8x36xf32>
    %5 = vector.extract_strided_slice %0 {offsets = [0, 0], sizes = [8, 1], strides = [1, 1]} : vector<8x3xf32> to vector<8x1xf32>
    %6 = vector.extract_strided_slice %1 {offsets = [0, 0], sizes = [1, 36], strides = [1, 1]} : vector<3x36xf32> to vector<1x36xf32>
    %7 = vector.broadcast %5 : vector<8x1xf32> to vector<8x36xf32>
    %8 = vector.broadcast %6 : vector<1x36xf32> to vector<8x36xf32>
    %9 = arith.mulf %7, %8 : vector<8x36xf32>
    %10 = arith.addf %4, %9 : vector<8x36xf32>
    %11 = vector.extract_strided_slice %0 {offsets = [0, 1], sizes = [8, 1], strides = [1, 1]} : vector<8x3xf32> to vector<8x1xf32>
    %12 = vector.extract_strided_slice %1 {offsets = [1, 0], sizes = [1, 36], strides = [1, 1]} : vector<3x36xf32> to vector<1x36xf32>
    %13 = vector.broadcast %11 : vector<8x1xf32> to vector<8x36xf32>
    %14 = vector.broadcast %12 : vector<1x36xf32> to vector<8x36xf32>
    %15 = arith.mulf %13, %14 : vector<8x36xf32>
    %16 = arith.addf %10, %15 : vector<8x36xf32>
    %17 = vector.extract_strided_slice %0 {offsets = [0, 2], sizes = [8, 1], strides = [1, 1]} : vector<8x3xf32> to vector<8x1xf32>
    %18 = vector.extract_strided_slice %1 {offsets = [2, 0], sizes = [1, 36], strides = [1, 1]} : vector<3x36xf32> to vector<1x36xf32>
    %19 = vector.broadcast %17 : vector<8x1xf32> to vector<8x36xf32>
    %20 = vector.broadcast %18 : vector<1x36xf32> to vector<8x36xf32>
    %21 = arith.mulf %19, %20 : vector<8x36xf32>
    %22 = arith.addf %16, %21 : vector<8x36xf32>
    %c0_5 = arith.constant 0 : index
    %c0_6 = arith.constant 0 : index
    %23 = vector.load %arg5[%c0_5, %c0_6] : memref<8x36xf32, #tpu.memory_space<vmem>>, vector<8x36xf32>
    tpu.vector_store %arg5[%c0_5, %c0_6], %22 {strides = array<i32>} : memref<8x36xf32, #tpu.memory_space<vmem>>, vector<8x36xf32>,
    return
  }
  func.func @transform_0(%arg0: i32, %arg1: i32) -> (i32, i32) {
    %c0_i32 = arith.constant 0 : i32
    %c0_i32_0 = arith.constant 0 : i32
    return %arg0, %c0_i32 : i32, i32
  }
  func.func @transform_1(%arg0: i32, %arg1: i32) -> (i32, i32) {
    %c0_i32 = arith.constant 0 : i32
    %c0_i32_0 = arith.constant 0 : i32
    return %c0_i32, %arg1 : i32, i32
  }
  func.func @transform_2(%arg0: i32, %arg1: i32) -> (i32, i32) {
    %c0_i32 = arith.constant 0 : i32
    %c0_i32_0 = arith.constant 0 : i32
    return %c0_i32, %arg1 : i32, i32
  }
  func.func @transform_3(%arg0: i32, %arg1: i32) -> (i32, i32) {
    %c0_i32 = arith.constant 0 : i32
    return %arg0, %arg1 : i32, i32
  }
}

</mosaic_0001>

<bundles_post_ra>
// kernel: consequents_forward.1
= control target key start
LH: loop header
LB: loop body
LE: loop exit
PB: predicated region body
PF: predicated region fallthrough
CT: control target
= control target key end

     0   :  { %v104_v1 = vmov 0   ;;  %v105_v2 = vmov 2   ;;  %s149_s0 = inlined_call_operand.vmem [shape: f32[8,3], index: 0, kind: input, shape index: {}]   ;;  %s150_s1 = inlined_call_operand.vmem [shape: f32[3,36], index: 1, kind: input, shape index: {}]   ;;  %s151_s2 = inlined_call_operand.vmem [shape: f32[1,36], index: 2, kind: input, shape index: {}]   ;;  %s152_s3 = inlined_call_operand.hbm [shape: f32[8,36], index: 3, kind: output, shape index: {}]  }
   0x1   :  { %v15_v0 = vld [vmem:[%s149_s0] sm:$0xff]  ;;  %76 = vset.pattern.permute.xlu0 %v104_v1  ;;  %78 = vset.pattern.permute.xlu1 %v105_v2 }
   0x2   :  { %8 = vsyncpa [#allocation3], 0  ;;  %26 = vperm.xlu0 %76, %v15_v0   ;;  %46 = vperm.xlu1 %78, %v15_v0   ;;  %v106_v3 = vmov 1   ;;  %v29_v4 = vlaneseq  ;;  %v16_v7 = vld [vmem:[%s150_s1] sm:$0x7]  ;;  %s107_s17 = smov [#allocation2]  }
   0x3   :  { %v71_v15 = vld [vmem:[%s151_s2] ss:$0 sm:$0xff]  ;;  %s63_s18 = sshll.u32 %s107_s17, 4  ;;  %vm55_vm0 = vcmask 293888   ;;  %s64_s18 = int_to_ptr.vmem [resolvable:$true] %s63_s18 }
   0x4   :  { %v30_v5 = vshrl.u32 %v29_v4, 7  ;;  %s80_s1 = scalar_lea.vmem %s64_s18, 128  ;;  %p85_p1 = scmp.lt.s32.totalorder %s64_s18, %s64_s18 }
   0x5   :  { %p81_p0 = scmp.ne.s32.totalorder %s64_s18, %s80_s1  ;;  %p86_p2 = scmp.lt.s32.totalorder %s80_s1, %s80_s1 }
   0x6   :  { %77 = vset.pattern.permute.xlu0 %v106_v3  ;;  %v31_v6 = vsub.s32 0, %v30_v5  ;;  %v41_v9 = vsub.s32 1, %v30_v5  ;;  %v51_v10 = vsub.s32 2, %v30_v5 }
   0x7   :  { %36 = vperm.xlu0 %77, %v15_v0   ;;  %p87_p3 = por %p86_p2, %p85_p1 }
   0x8   :  { %v32_v8 = vrot.slane %v16_v7, %v31_v6  ;;  %v42_v13 = vrot.slane %v16_v7, %v41_v9  ;;  %v52_v14 = vrot.slane %v16_v7, %v51_v10 }
   0x9   :  { %p88_p4 = pnand %p87_p3, %p81_p0 }
   0xb   :  { %79 = vset.pattern.permute.xlu0 %v105_v2 }
  0x81   :  { %v27_v11 = vpop.permute.xlu0 %26  ;;  %v47_v16 = vpop.permute.xlu1 %46 }
  0x82   :  { %v33_v12 = vmul.f32 %v32_v8, %v27_v11  ;;  %v53_v20 = vmul.f32 %v52_v14, %v47_v16 }
  0x84   :  { %v34_v18 = vadd.f32 %v71_v15, %v33_v12 }
  0x86   :  { %v37_v17 = vpop.permute.xlu0 %36 }
  0x87   :  { %v43_v19 = vmul.f32 %v42_v13, %v37_v17 }
  0x89   :  { %v44_v21 = vadd.f32 %v43_v19, %v34_v18 }
  0x8b   :  { %v54_v22 = vadd.f32 %v53_v20, %v44_v21 }
  0x8d   :  { %56 = vst.msk [vmem:[#allocation2] sm:$0xff] %vm55_vm0, %v54_v22 }
  0x8e   :  { %91 = shalt.err (!%p88_p4)
}
  0x8f   :  { %s92_s20 = scalar_lea.hbm %s152_s3, 128 }
  0x90   :  { %p93_p5 = scmp.ne.s32.totalorder %s152_s3, %s92_s20  ;;  %p96_p6 = scmp.lt.u32.totalorder %s92_s20, %s152_s3 }
  0x92   :  { %p98_p7 = pnand %p96_p6, %p93_p5 }
  0x94   :  { %101 = shalt.err (!%p98_p7)
}
  0x95   :  { %66 = dma.vmem_to_hbm [thread:$0]  %s64_s18, 128, %s152_s3, [#allocation3]  }
  0x96   :  { %102 = dma.done.wait [#allocation3], 128  }
  0x97   :  { %103 = vsyncadd [#allocation3], 4294967168 }
  0x98   :  { %70 = vsyncpa [#allocation3], 1 }

</bundles_post_ra>
